<compile_context>
chip_gen: v7x
topology: tpu7x:2x2x1
jax: 0.10.0
libtpu: 0.0.40
codegen_flags: <defaults>
</compile_context>

<pallas_src>
import numpy as np
import jax
import jax.numpy as jnp
from jax.experimental import pallas as pl
from jax.experimental.pallas import tpu as pltpu


def attn_kernel(q_ref, k_ref, v_ref, w_ref, b_ref, mask_ref, o_ref):
    B, Lq, D = q_ref.shape
    _, Lk, _ = k_ref.shape
    nq = B * Lq
    nk = B * Lk

    # --- Fused projections: one (B*(Lq+2Lk), D) @ (D, 3D) MXU matmul.
    # Row counts are multiples of 8 -> the reshapes/concat are sublane-only.
    q2 = q_ref[...].reshape(nq, D)
    k2 = k_ref[...].reshape(nk, D)
    v2 = v_ref[...].reshape(nk, D)
    x_all = jnp.concatenate([q2, k2, v2], axis=0)            # (nq + 2*nk, D)

    # Bias is per-output-column, so adding the packed (1, 3D) bias to the whole
    # result and then slicing the diagonal blocks applies exactly bq/bk/bv.
    proj = jnp.dot(x_all, w_ref[...],
                   preferred_element_type=jnp.float32) + b_ref[...]

    qp = proj[0:nq, 0:D].reshape(B, Lq, D)                    # scale already folded into wq/bq
    kp = proj[nq:nq + nk, D:2 * D].reshape(B, Lk, D)
    vp = proj[nq + nk:nq + 2 * nk, 2 * D:3 * D].reshape(B, Lk, D)

    # --- Scores: batched contraction over D (k never explicitly transposed).
    # Kept in f32: bf16 here turns into absolute logit error at the module's
    # sqrt(D)-inflated logit scale (see header comment).
    qk = jax.lax.dot_general(
        qp, kp,
        dimension_numbers=(((2,), (2,)), ((0,), (0,))),
        preferred_element_type=jnp.float32,
    )

    # --- Numerically stable softmax along the last axis.
    m = jnp.max(qk, axis=-1, keepdims=True)
    e = jnp.exp(qk - m)
    s = jnp.sum(e, axis=-1, keepdims=True)

    # --- Dropout: mask already carries the 1/(1-p) survivor scale, so
    # normalization + dropout is (e * mask) * (1/s) with the EUP reciprocal.
    p = (e * mask_ref[...]) * pl.reciprocal(s, approx=True)

    # --- Attention output (bf16 operands, f32 accumulate: ~0.5% rel error).
    out = jax.lax.dot_general(
        p.astype(jnp.bfloat16), vp.astype(jnp.bfloat16),
        dimension_numbers=(((2,), (1,)), ((0,), (0,))),
        preferred_element_type=jnp.float32,
    )
    o_ref[...] = out.astype(o_ref.dtype)


def model_forward(query, key, value, params, dropout_mask, *, num_heads=1):
    B, Lq, D = query.shape
    _, Lk, _ = key.shape
    wq, bq, wk, bk, wv, bv = params
    scale = float(np.sqrt(D // num_heads))

    # Host-side parameter prep (one-time in a real model):
    #   * fold the score scale into the q projection (deletes a full VPU
    #     multiply over the (B, Lq, Lk) scores tensor in-kernel),
    #   * pack the three weights / biases into single operands (10 -> 6 kernel
    #     arguments -> fewer tiny DMA descriptors at this overhead-bound size).
    w_packed = jnp.concatenate([wq * scale, wk, wv], axis=1)   # (D, 3D)
    b_packed = jnp.concatenate([bq * scale, bk, bv], axis=1)   # (1, 3D)

    vmem = pl.BlockSpec(memory_space=pltpu.MemorySpace.VMEM)

    # Tiny-but-accurate cost estimate so XLA overlaps the call with neighbors.
    rows = B * (Lq + 2 * Lk)
    flops = 2 * rows * D * (3 * D) + 2 * (2 * B * Lq * Lk * D)
    bytes_accessed = 4 * (B * Lq * D + 2 * B * Lk * D + D * 3 * D + 3 * D
                          + B * Lq * Lk + B * Lq * D)
    cost = pl.CostEstimate(flops=flops,
                           transcendentals=B * Lq * Lk + B * Lq,
                           bytes_accessed=bytes_accessed)

    # Single invocation (no grid): the whole problem (< 100 KiB) fits in VMEM
    # on every TPU generation (well under v7x's 64 MiB physical / 32 MiB scoped
    # budget), so there is no per-grid-step pipeline overhead and the MXU sees
    # one fused (rows, D) @ (D, 3D) matmul instead of 3*B slivers.  If B or L
    # grows, add grid=(B,) with dimension_semantics=("parallel",) to use both
    # v7x TensorCores.
    return pl.pallas_call(
        attn_kernel,
        out_shape=jax.ShapeDtypeStruct((B, Lq, D), jnp.float32),
        in_specs=[vmem] * 6,
        out_specs=vmem,
        cost_estimate=cost,
    )(query, key, value, w_packed, b_packed, dropout_mask)


def reference_forward(query, key, value, params, dropout_mask, *, num_heads=1):
    """Pure-JAX f32 reference with identical semantics (same precomputed mask)."""
    wq, bq, wk, bk, wv, bv = params
    D = query.shape[-1]
    scale = float(np.sqrt(D // num_heads))
    q = query @ wq + bq
    k = key @ wk + bk
    v = value @ wv + bv
    qk = jnp.einsum("bqd,bkd->bqk", q, k) * scale
    p = jax.nn.softmax(qk, axis=-1) * dropout_mask
    return jnp.einsum("bqk,bkd->bqd", p, v)


def init_params(rng, dim_model):
    """torch.nn.Linear-style init: uniform(-1/sqrt(in), 1/sqrt(in))."""
    bound = 1.0 / np.sqrt(dim_model)
    keys = jax.random.split(rng, 6)

    def u(k, shape):
        return jax.random.uniform(k, shape, jnp.float32, -bound, bound)

    wq = u(keys[0], (dim_model, dim_model))   # stored [in, out] (pre-transposed)
    bq = u(keys[1], (1, dim_model))
    wk = u(keys[2], (dim_model, dim_model))
    bk = u(keys[3], (1, dim_model))
    wv = u(keys[4], (dim_model, dim_model))
    bv = u(keys[5], (1, dim_model))
    return (wq, bq, wk, bk, wv, bv)


if __name__ == "__main__":
    # Small shapes consistent with the module's forward:
    #   query [B, Lq, D], key/value [B, Lk, D], dim_model = D, num_heads = 1.
    # (Lq, Lk multiples of 8 so in-kernel reshapes stay layout-free.)
    B, Lq, Lk, D = 2, 16, 32, 32
    num_heads = 1
    dropout_p = 0.5   # F.dropout default (training=True) semantics

    root = jax.random.PRNGKey(0)
    k_q, k_k, k_v, k_p, k_d = jax.random.split(root, 5)

    query = jax.random.normal(k_q, (B, Lq, D), jnp.float32)
    key = jax.random.normal(k_k, (B, Lk, D), jnp.float32)
    value = jax.random.normal(k_v, (B, Lk, D), jnp.float32)
    params = init_params(k_p, D)

    # Deterministic dropout keep-mask with the 1/(1-p) scale folded in.
    keep = jax.random.bernoulli(k_d, p=1.0 - dropout_p, shape=(B, Lq, Lk))
    dropout_mask = keep.astype(jnp.float32) * (1.0 / (1.0 - dropout_p))

    out = model_forward(query, key, value, params, dropout_mask,
                        num_heads=num_heads)
    jax.block_until_ready(out)

    ref = reference_forward(query, key, value, params, dropout_mask,
                            num_heads=num_heads)

    assert out.shape == (B, Lq, D), out.shape
    assert bool(jnp.all(jnp.isfinite(out)))
    np.testing.assert_allclose(np.asarray(out), np.asarray(ref),
                               rtol=5e-2, atol=5e-2)
    print("KERNEL_OK")
</pallas_src>

<mosaic_0001>
module attributes {stable_mosaic.version = 11 : i64} {
  func.func @attn_kernel(%arg0: memref<2x16x32xf32, #tpu.memory_space<vmem>>, %arg1: memref<2x32x32xf32, #tpu.memory_space<vmem>>, %arg2: memref<2x32x32xf32, #tpu.memory_space<vmem>>, %arg3: memref<32x96xf32, #tpu.memory_space<vmem>>, %arg4: memref<1x96xf32, #tpu.memory_space<vmem>>, %arg5: memref<2x16x32xf32, #tpu.memory_space<vmem>>, %arg6: memref<2x16x32xf32, #tpu.memory_space<vmem>>) attributes {dimension_semantics = [], scalar_prefetch = 0 : i64, scratch_operands = 0 : i64, tpu.core_type = #tpu.core_type<tc>} {
    %c0 = arith.constant 0 : index
    %c0_0 = arith.constant 0 : index
    %c0_1 = arith.constant 0 : index
    %0 = vector.load %arg0[%c0, %c0_0, %c0_1] : memref<2x16x32xf32, #tpu.memory_space<vmem>>, vector<2x16x32xf32>
    %1 = vector.shape_cast %0 : vector<2x16x32xf32> to vector<32x32xf32>
    %c0_2 = arith.constant 0 : index
    %c0_3 = arith.constant 0 : index
    %c0_4 = arith.constant 0 : index
    %2 = vector.load %arg1[%c0_2, %c0_3, %c0_4] : memref<2x32x32xf32, #tpu.memory_space<vmem>>, vector<2x32x32xf32>
    %3 = vector.shape_cast %2 : vector<2x32x32xf32> to vector<64x32xf32>
    %c0_5 = arith.constant 0 : index
    %c0_6 = arith.constant 0 : index
    %c0_7 = arith.constant 0 : index
    %4 = vector.load %arg2[%c0_5, %c0_6, %c0_7] : memref<2x32x32xf32, #tpu.memory_space<vmem>>, vector<2x32x32xf32>
    %5 = vector.shape_cast %4 : vector<2x32x32xf32> to vector<64x32xf32>
    %6 = tpu.concatenate %1, %3, %5 in 0 : vector<32x32xf32>, vector<64x32xf32>, vector<64x32xf32> -> vector<160x32xf32>
    %c0_8 = arith.constant 0 : index
    %c0_9 = arith.constant 0 : index
    %7 = vector.load %arg3[%c0_8, %c0_9] : memref<32x96xf32, #tpu.memory_space<vmem>>, vector<32x96xf32>
    %cst = arith.constant dense<0.000000e+00> : vector<160x96xf32>
    %8 = tpu.matmul %6, %7, %cst {dimension_numbers = #tpu.dot_dimension_numbers<[1], [0], [0], [1], [0, 0, 1, 1], [], []>} : vector<160x32xf32>, vector<32x96xf32>, vector<160x96xf32> -> vector<160x96xf32>
    %c0_10 = arith.constant 0 : index
    %c0_11 = arith.constant 0 : index
    %9 = vector.load %arg4[%c0_10, %c0_11] : memref<1x96xf32, #tpu.memory_space<vmem>>, vector<1x96xf32>
    %10 = vector.broadcast %9 : vector<1x96xf32> to vector<160x96xf32>
    %11 = arith.addf %8, %10 : vector<160x96xf32>
    %12 = vector.extract_strided_slice %11 {offsets = [0, 0], sizes = [32, 32], strides = [1, 1]} : vector<160x96xf32> to vector<32x32xf32>
    %13 = vector.shape_cast %12 : vector<32x32xf32> to vector<2x16x32xf32>
    %14 = vector.extract_strided_slice %11 {offsets = [32, 32], sizes = [64, 32], strides = [1, 1]} : vector<160x96xf32> to vector<64x32xf32>
    %15 = vector.shape_cast %14 : vector<64x32xf32> to vector<2x32x32xf32>
    %16 = vector.extract_strided_slice %11 {offsets = [96, 64], sizes = [64, 32], strides = [1, 1]} : vector<160x96xf32> to vector<64x32xf32>
    %17 = vector.shape_cast %16 : vector<64x32xf32> to vector<2x32x32xf32>
    %cst_12 = arith.constant dense<0.000000e+00> : vector<2x16x32xf32>
    %18 = tpu.matmul %13, %15, %cst_12 {dimension_numbers = #tpu.dot_dimension_numbers<[2], [2], [1], [1], [0, 0, 0, 1, 1, 1], [0], [0]>} : vector<2x16x32xf32>, vector<2x32x32xf32>, vector<2x16x32xf32> -> vector<2x16x32xf32>
    %cst_13 = arith.constant dense<0xFF800000> : vector<2x16xf32>
    %19 = vector.multi_reduction <maximumf>, %18, %cst_13 [2] : vector<2x16x32xf32> to vector<2x16xf32>
    %20 = vector.shape_cast %19 : vector<2x16xf32> to vector<2x16x1xf32>
    %21 = vector.broadcast %20 : vector<2x16x1xf32> to vector<2x16x32xf32>
    %22 = arith.subf %18, %21 : vector<2x16x32xf32>
    %23 = math.exp %22 : vector<2x16x32xf32>
    %cst_14 = arith.constant dense<0.000000e+00> : vector<2x16xf32>
    %24 = vector.multi_reduction <add>, %23, %cst_14 [2] : vector<2x16x32xf32> to vector<2x16xf32>
    %25 = vector.shape_cast %24 : vector<2x16xf32> to vector<2x16x1xf32>
    %c0_15 = arith.constant 0 : index
    %c0_16 = arith.constant 0 : index
    %c0_17 = arith.constant 0 : index
    %26 = vector.load %arg5[%c0_15, %c0_16, %c0_17] : memref<2x16x32xf32, #tpu.memory_space<vmem>>, vector<2x16x32xf32>
    %27 = arith.mulf %23, %26 : vector<2x16x32xf32>
    %28 = tpu.reciprocal %25 {approx = true} : vector<2x16x1xf32> -> vector<2x16x1xf32>
    %29 = vector.broadcast %28 : vector<2x16x1xf32> to vector<2x16x32xf32>
    %30 = arith.mulf %27, %29 : vector<2x16x32xf32>
    %31 = arith.truncf %30 : vector<2x16x32xf32> to vector<2x16x32xbf16>
    %32 = arith.truncf %17 : vector<2x32x32xf32> to vector<2x32x32xbf16>
    %cst_18 = arith.constant dense<0.000000e+00> : vector<2x16x32xf32>
    %33 = tpu.matmul %31, %32, %cst_18 {dimension_numbers = #tpu.dot_dimension_numbers<[2], [1], [1], [2], [0, 0, 0, 1, 1, 2], [0], [0]>} : vector<2x16x32xbf16>, vector<2x32x32xbf16>, vector<2x16x32xf32> -> vector<2x16x32xf32>
    %c0_19 = arith.constant 0 : index
    %c0_20 = arith.constant 0 : index
    %c0_21 = arith.constant 0 : index
    %34 = vector.load %arg6[%c0_19, %c0_20, %c0_21] : memref<2x16x32xf32, #tpu.memory_space<vmem>>, vector<2x16x32xf32>
    tpu.vector_store %arg6[%c0_19, %c0_20, %c0_21], %33 {strides = array<i32>} : memref<2x16x32xf32, #tpu.memory_space<vmem>>, vector<2x16x32xf32>,
    return
  }
}

</mosaic_0001>

<bundles_post_ra>
// kernel: tpu_custom_call.1
= control target key start
LH: loop header
LB: loop body
LE: loop exit
PB: predicated region body
PF: predicated region fallthrough
CT: control target
= control target key end

     0   :  { %11 = vsyncpa [#allocation3], 0  ;;  %s1359_s0 = inlined_call_operand.hbm [shape: f32[2,16,32], index: 0, kind: input, shape index: {}]   ;;  %s1360_s1 = inlined_call_operand.hbm [shape: f32[2,32,32], index: 1, kind: input, shape index: {}]   ;;  %s1361_s2 = inlined_call_operand.hbm [shape: f32[2,32,32], index: 2, kind: input, shape index: {}]   ;;  %s1362_s3 = inlined_call_operand.hbm [shape: f32[32,96], index: 3, kind: input, shape index: {}]   ;;  %s1363_s4 = inlined_call_operand.vmem [shape: f32[1,96], index: 4, kind: input, shape index: {}]   ;;  %s1364_s5 = inlined_call_operand.hbm [shape: f32[2,16,32], index: 5, kind: input, shape index: {}]   ;;  %s1365_s6 = inlined_call_operand.hbm [shape: f32[2,16,32], index: 6, kind: output, shape index: {}]  }
   0x1   :  { %12 = vsyncpa [#allocation6], 0 }
   0x2   :  { %13 = vsyncpa [#allocation9], 0 }
   0x3   :  { %14 = vsyncpa [#allocation4], 0  ;;  %s1110_s21 = smov [#allocation5]   ;;  %s1111_s23 = smov [#allocation8]  }
   0x4   :  { %s32_s22 = sshll.u32 %s1110_s21, 4  ;;  %s56_s24 = sshll.u32 %s1111_s23, 4  ;;  %s33_s22 = int_to_ptr.vmem [resolvable:$true] %s32_s22  ;;  %s1157_s24 = int_to_ptr.vmem [resolvable:$true] %s56_s24 }
   0x5   :  { %s970_s27 = scalar_lea.hbm %s1360_s1, 1024 }
   0x6   :  { %p971_p0 = scmp.ne.s32.totalorder %s1360_s1, %s970_s27  ;;  %p974_p1 = scmp.lt.u32.totalorder %s970_s27, %s1360_s1 }
   0x8   :  { %p976_p2 = pnand %p974_p1, %p971_p0 }
   0xa   :  { %979 = shalt.err (!%p976_p2)
}
   0xb   :  { %s980_s8 = scalar_lea.vmem %s33_s22, 1024  ;;  %p985_p4 = scmp.lt.s32.totalorder %s33_s22, %s33_s22 }
   0xc   :  { %p981_p3 = scmp.ne.s32.totalorder %s33_s22, %s980_s8  ;;  %p986_p5 = scmp.lt.s32.totalorder %s980_s8, %s980_s8 }
   0xe   :  { %p987_p6 = por %p986_p5, %p985_p4 }
  0x10   :  { %p988_p7 = pnand %p987_p6, %p981_p3 }
  0x12   :  { %991 = shalt.err (!%p988_p7)
}
  0x13   :  { %s1112_s9 = smov 128   ;;  %s1113_s10 = smov 8  }
  0x14   :  { %38 = dma.hbm_to_vmem [thread:$0]  %s1360_s1, 1024, %s33_s22, [#allocation6], %s1112_s9, %s1112_s9, %s1113_s10  }
  0x15   :  { %s992_s15 = scalar_lea.hbm %s1362_s3, 512 }
  0x16   :  { %p993_p8 = scmp.ne.s32.totalorder %s1362_s3, %s992_s15  ;;  %p996_p9 = scmp.lt.u32.totalorder %s992_s15, %s1362_s3 }
  0x18   :  { %p998_p10 = pnand %p996_p9, %p993_p8 }
  0x1a   :  { %1001 = shalt.err (!%p998_p10)
}
  0x1b   :  { %s1002_s20 = scalar_lea.vmem %s1157_s24, 512  ;;  %p1007_p12 = scmp.lt.s32.totalorder %s1157_s24, %s1157_s24 }
  0x1c   :  { %p1003_p11 = scmp.ne.s32.totalorder %s1157_s24, %s1002_s20  ;;  %p1008_p13 = scmp.lt.s32.totalorder %s1002_s20, %s1002_s20 }
  0x1e   :  { %p1009_p0 = por %p1008_p13, %p1007_p12 }
  0x20   :  { %p1010_p1 = pnand %p1009_p0, %p1003_p11 }
  0x22   :  { %1013 = shalt.err (!%p1010_p1)
}
  0x23   :  { %62 = dma.hbm_to_vmem [thread:$0]  %s1362_s3, 512, %s1157_s24, [#allocation9], %s1112_s9, %s1112_s9, %s1113_s10  }
  0x24   :  { %s1114_s22 = smov [#allocation2]   ;;  %s1115_s25 = smov [#allocation7]  }
  0x25   :  { %s20_s23 = sshll.u32 %s1114_s22, 4  ;;  %s44_s26 = sshll.u32 %s1115_s25, 4  ;;  %s21_s23 = int_to_ptr.vmem [resolvable:$true] %s20_s23  ;;  %s1194_s26 = int_to_ptr.vmem [resolvable:$true] %s44_s26 }
  0x26   :  { %s1014_s29 = scalar_lea.hbm %s1359_s0, 512 }
  0x27   :  { %p1015_p2 = scmp.ne.s32.totalorder %s1359_s0, %s1014_s29  ;;  %p1018_p3 = scmp.lt.u32.totalorder %s1014_s29, %s1359_s0 }
  0x29   :  { %p1020_p4 = pnand %p1018_p3, %p1015_p2 }
  0x2b   :  { %1023 = shalt.err (!%p1020_p4)
}
  0x2c   :  { %s1024_s3 = scalar_lea.vmem %s21_s23, 512  ;;  %p1029_p6 = scmp.lt.s32.totalorder %s21_s23, %s21_s23 }
  0x2d   :  { %p1025_p5 = scmp.ne.s32.totalorder %s21_s23, %s1024_s3  ;;  %p1030_p7 = scmp.lt.s32.totalorder %s1024_s3, %s1024_s3 }
  0x2f   :  { %p1031_p8 = por %p1030_p7, %p1029_p6 }
  0x31   :  { %p1032_p9 = pnand %p1031_p8, %p1025_p5 }
  0x33   :  { %1035 = shalt.err (!%p1032_p9)
}
  0x34   :  { %26 = dma.hbm_to_vmem [thread:$0]  %s1359_s0, 512, %s21_s23, [#allocation3], %s1112_s9, %s1112_s9, %s1113_s10  }
  0x35   :  { %s1036_s15 = scalar_lea.hbm %s1361_s2, 1024 }
  0x36   :  { %p1037_p10 = scmp.ne.s32.totalorder %s1361_s2, %s1036_s15  ;;  %p1040_p11 = scmp.lt.u32.totalorder %s1036_s15, %s1361_s2 }
  0x38   :  { %p1042_p12 = pnand %p1040_p11, %p1037_p10 }
  0x3a   :  { %1045 = shalt.err (!%p1042_p12)
}
  0x3b   :  { %s1046_s20 = scalar_lea.vmem %s1194_s26, 1024  ;;  %p1051_p0 = scmp.lt.s32.totalorder %s1194_s26, %s1194_s26 }
  0x3c   :  { %p1047_p13 = scmp.ne.s32.totalorder %s1194_s26, %s1046_s20  ;;  %p1052_p1 = scmp.lt.s32.totalorder %s1046_s20, %s1046_s20 }
  0x3e   :  { %p1053_p2 = por %p1052_p1, %p1051_p0 }
  0x40   :  { %p1054_p3 = pnand %p1053_p2, %p1047_p13 }
  0x42   :  { %1057 = shalt.err (!%p1054_p3)
}
  0x43   :  { %50 = dma.hbm_to_vmem [thread:$0]  %s1361_s2, 1024, %s1194_s26, [#allocation6], %s1112_s9, %s1112_s9, %s1113_s10  }
  0x44   :  { %s1116_s21 = smov [#allocation10]   ;;  %s1058_s27 = scalar_lea.hbm %s1364_s5, 512 }
  0x45   :  { %s70_s22 = sshll.u32 %s1116_s21, 4  ;;  %p1059_p4 = scmp.ne.s32.totalorder %s1364_s5, %s1058_s27  ;;  %s71_s22 = int_to_ptr.vmem [resolvable:$true] %s70_s22 }
  0x46   :  { %p1062_p5 = scmp.lt.u32.totalorder %s1058_s27, %s1364_s5 }
  0x48   :  { %p1064_p6 = pnand %p1062_p5, %p1059_p4 }
  0x4a   :  { %1067 = shalt.err (!%p1064_p6)
}
  0x4b   :  { %s1068_s8 = scalar_lea.vmem %s71_s22, 512  ;;  %p1073_p8 = scmp.lt.s32.totalorder %s71_s22, %s71_s22 }
  0x4c   :  { %p1069_p7 = scmp.ne.s32.totalorder %s71_s22, %s1068_s8  ;;  %p1074_p9 = scmp.lt.s32.totalorder %s1068_s8, %s1068_s8 }
  0x4e   :  { %p1075_p10 = por %p1074_p9, %p1073_p8 }
  0x50   :  { %p1076_p11 = pnand %p1075_p10, %p1069_p7 }
  0x52   :  { %1079 = shalt.err (!%p1076_p11)
}
  0x53   :  { %76 = dma.hbm_to_vmem [thread:$0]  %s1364_s5, 512, %s71_s22, [#allocation9], %s1112_s9, %s1112_s9, %s1113_s10  }
  0x54   :  { %1102 = dma.done.wait [#allocation3], 512  }
  0x55   :  { %1103 = vsyncadd [#allocation3], 4294966784 }
  0x56   :  { %1104 = dma.done.wait [#allocation6], 2048  }
  0x57   :  { %1105 = vsyncadd [#allocation6], 4294965248 }
  0x58   :  { %1106 = dma.done.wait [#allocation9], 1024  }
  0x59   :  { %1107 = vsyncadd [#allocation9], 4294966272  ;;  %vm124_vm0 = vcmask 261120   ;;  %v113_v0 = vld [vmem:[#allocation8] sm:$0xff]  ;;  %v114_v1 = vld [vmem:[#allocation8 + $0x8] sm:$0xff]  ;;  %s1118_s3 = smov 64  }
  0x5a   :  { %v115_v2 = vld [vmem:[#allocation8 + $0x10] sm:$0xff]  ;;  %v890_v3 = vpack.c.bf16 %v114_v1, %v113_v0  ;;  %v116_v4 = vld [vmem:[#allocation8 + $0x18] sm:$0xff]  ;;  %v93_v5 = vld [vmem:[#allocation2] sm:$0xff]  ;;  %vm1120_vm2 = vmmov 0   ;;  %s1121_s24 = smov [#allocation11]  }
  0x5b   :  { %v894_v6 = vpack.c.bf16 %v116_v4, %v115_v2  ;;  %822 = vmatprep.mubr.msk.f32.mxu0 %vm124_vm0, %v93_v5  ;;  %v94_v7 = vld [vmem:[#allocation2 + $0x8] sm:$0xff]  ;;  %v95_v8 = vld [vmem:[#allocation2 + $0x10] sm:$0xff]  ;;  %v96_v9 = vld [vmem:[#allocation2 + $0x18] sm:$0xff]  ;;  %s723_s12 = sshll.u32 %s1121_s24, 4  ;;  %s724_s12 = int_to_ptr.vmem [resolvable:$true] %s723_s12 }
  0x5c   :  { %891 = vmatprep.subr.bf16.mxu0 %v890_v3  ;;  %v97_v10 = vld [vmem:[#allocation5] sm:$0xff]  ;;  %v98_v11 = vld [vmem:[#allocation5 + $0x8] sm:$0xff]  ;;  %v99_v12 = vld [vmem:[#allocation5 + $0x10] sm:$0xff]  ;;  %s1080_s13 = scalar_lea.vmem %s724_s12, 512  ;;  %p1085_p13 = scmp.lt.s32.totalorder %s724_s12, %s724_s12 }
  0x5d   :  { %893 = vmatpush3.bf16.msra.mxu0 %v890_v3  ;;  %v100_v13 = vld [vmem:[#allocation5 + $0x18] sm:$0xff]  ;;  %v101_v14 = vld [vmem:[#allocation5 + $0x20] sm:$0xff]  ;;  %v102_v15 = vld [vmem:[#allocation5 + $0x28] sm:$0xff]  ;;  %p1081_p12 = scmp.ne.s32.totalorder %s724_s12, %s1080_s13  ;;  %p1086_p0 = scmp.lt.s32.totalorder %s1080_s13, %s1080_s13 }
  0x5e   :  { %895 = vmatprep.subr.bf16.mxu0 %v894_v6  ;;  %v103_v16 = vld [vmem:[#allocation5 + $0x30] sm:$0xff]  ;;  %v104_v17 = vld [vmem:[#allocation5 + $0x38] sm:$0xff]  ;;  %v1261_v18 = vld [vmem:[%s1363_s4] ss:$0 sm:$0xff]  ;;  %s1117_s4 = smov 96  }
  0x5f   :  { %v105_v44 = vld [vmem:[#allocation7] sm:$0xff]  ;;  %v106_v45 = vld [vmem:[#allocation7 + $0x8] sm:$0xff]  ;;  %v107_v46 = vld [vmem:[#allocation7 + $0x10] sm:$0xff]  ;;  %p1087_p1 = por %p1086_p0, %p1085_p13 }
  0x60   :  { %v108_v47 = vld [vmem:[#allocation7 + $0x18] sm:$0xff]  ;;  %vm1281_vm1 = vmpackc.low %vm124_vm0, %vm124_vm0  ;;  %v109_v4 = vld [vmem:[#allocation7 + $0x20] sm:$0xff] }
  0x61   :  { %897 = vmatpush3.bf16.msra.mxu0 %v894_v6  ;;  %v110_v5 = vld [vmem:[#allocation7 + $0x28] sm:$0xff]  ;;  %v111_v6 = vld [vmem:[#allocation7 + $0x30] sm:$0xff]  ;;  %p1088_p2 = pnand %p1087_p1, %p1081_p12 }
  0x64   :  { %823 = vmatmul.mubr.msk.f32.vlgmr.msra.gmra.mrb[0].mxu0 %vm124_vm0, %v94_v7  ;;  %v112_v7 = vld [vmem:[#allocation7 + $0x38] sm:$0xff] }
  0x65   :  { %825 = vmatprep.mubr.msk.f32.mxu0 %vm124_vm0, %v95_v8 }
  0x68   :  { %826 = vmatmul.mubr.msk.f32.gmra.mrb[2].mxu0 %vm124_vm0, %v96_v9 }
  0x69   :  { %828 = vmatprep.mubr.msk.f32.mxu0 %vm124_vm0, %v97_v10 }
  0x6c   :  { %829 = vmatmul.mubr.msk.f32.gmra.mrb[4].mxu0 %vm124_vm0, %v98_v11 }
  0x6d   :  { %831 = vmatprep.mubr.msk.f32.mxu0 %vm124_vm0, %v99_v12 }
  0x70   :  { %832 = vmatmul.mubr.msk.f32.gmra.mrb[6].mxu0 %vm124_vm0, %v100_v13 }
  0x71   :  { %834 = vmatprep.mubr.msk.f32.mxu0 %vm124_vm0, %v101_v14 }
  0x74   :  { %835 = vmatmul.mubr.msk.f32.gmra.mrb[8].mxu0 %vm124_vm0, %v102_v15 }
  0x75   :  { %837 = vmatprep.mubr.msk.f32.mxu0 %vm124_vm0, %v103_v16 }
  0x78   :  { %838 = vmatmul.mubr.msk.f32.gmra.mrb[10].mxu0 %vm124_vm0, %v104_v17 }
  0x79   :  { %840 = vmatprep.mubr.msk.f32.mxu0 %vm124_vm0, %v105_v44 }
  0x7c   :  { %841 = vmatmul.mubr.msk.f32.gmra.mrb[12].mxu0 %vm124_vm0, %v106_v45 }
  0x7d   :  { %843 = vmatprep.mubr.msk.f32.mxu0 %vm124_vm0, %v107_v46 }
  0x80   :  { %844 = vmatmul.mubr.msk.f32.gmra.mrb[14].mxu0 %vm124_vm0, %v108_v47 }
  0x81   :  { %846 = vmatprep.mubr.msk.f32.mxu0 %vm124_vm0, %v109_v4 }
  0x84   :  { %847 = vmatmul.mubr.msk.f32.gmra.mrb[16].mxu0 %vm124_vm0, %v110_v5 }
  0x85   :  { %849 = vmatprep.mubr.msk.f32.mxu0 %vm124_vm0, %v111_v6 }
  0x88   :  { %850 = vmatmul.mubr.msk.f32.gmra.mrb[18].mxu0 %vm124_vm0, %v112_v7 }
 0x137   :  { %v824_v19 = vpop.f32.mrb[0].mxu0 }
 0x138   :  { %v251_v20 = vpop.f32.mrb[1].mxu0  ;;  %v257_v0 = vadd.f32 %v824_v19, %v1261_v18 }
 0x139   :  { %v252_v21 = vadd.f32 %v1261_v18, %v251_v20 }
 0x13b   :  { %v1264_v22 = vpop.f32.mrb[2].mxu0  ;;  %860 = vmatprep.mubr.msk.f32.mxu1 %vm124_vm0, %v252_v21 }
 0x13c   :  { %v261_v23 = vpop.f32.mrb[3].mxu0  ;;  %v267_v3 = vadd.f32 %v1264_v22, %v1261_v18 }
 0x13d   :  { %v262_v2 = vadd.f32 %v1261_v18, %v261_v23 }
 0x13f   :  { %v830_v24 = vpop.f32.mrb[4].mxu0 }
 0x140   :  { %v277_v25 = vadd.f32 %v830_v24, %v1261_v18  ;;  %v271_v26 = vpop.f32.mrb[5].mxu0 }
 0x141   :  { %v272_v27 = vadd.f32 %v1261_v18, %v271_v26 }
 0x143   :  { %v934_v28 = vpack.i.bf16 %v277_v25, %v272_v27  ;;  %v833_v29 = vpop.f32.mrb[6].mxu0  ;;  %v1119_v27 = vmov 0.0  }
 0x144   :  { %v287_v30 = vadd.f32 %v833_v29, %v1261_v18  ;;  %v281_v31 = vpop.f32.mrb[7].mxu0  ;;  %882 = vmatprep.subr.bf16.mxu0 %v1119_v27  ;;  %886 = vmatprep.mubr.msk.bf16.mxu0 %vm1120_vm2, %v1119_v27 }
 0x145   :  { %935 = vrot.lane.b32.xlu0 %v934_v28, %s1117_s4  ;;  %v282_v32 = vadd.f32 %v1261_v18, %v281_v31 }
 0x147   :  { %v939_v33 = vpack.i.bf16 %v287_v30, %v282_v32  ;;  %v836_v34 = vpop.f32.mrb[8].mxu0 }
 0x148   :  { %v297_v35 = vadd.f32 %v836_v34, %v1261_v18  ;;  %v291_v36 = vpop.f32.mrb[9].mxu0 }
 0x149   :  { %940 = vrot.lane.b32.xlu0 %v939_v33, %s1117_s4  ;;  %v292_v37 = vadd.f32 %v1261_v18, %v291_v36 }
 0x14b   :  { %v944_v38 = vpack.i.bf16 %v297_v35, %v292_v37  ;;  %v839_v39 = vpop.f32.mrb[10].mxu0 }
 0x14c   :  { %v307_v40 = vadd.f32 %v839_v39, %v1261_v18  ;;  %v301_v41 = vpop.f32.mrb[11].mxu0 }
 0x14d   :  { %945 = vrot.lane.b32.xlu1 %v944_v38, %s1117_s4  ;;  %v302_v42 = vadd.f32 %v1261_v18, %v301_v41 }
 0x14f   :  { %v949_v43 = vpack.i.bf16 %v307_v40, %v302_v42  ;;  %v842_v8 = vpop.f32.mrb[12].mxu0 }
 0x150   :  { %v317_v9 = vadd.f32 %v842_v8, %v1261_v18  ;;  %v311_v10 = vpop.f32.mrb[13].mxu0 }
 0x151   :  { %950 = vrot.lane.b32.xlu1 %v949_v43, %s1117_s4  ;;  %v312_v11 = vadd.f32 %v1261_v18, %v311_v10  ;;  %v590_v10 = vld [vmem:[#allocation10 + $0x10] sm:$0xff] }
 0x153   :  { %v606_v12 = vpack.c.bf16 %v317_v9, %v312_v11  ;;  %v845_v22 = vpop.f32.mrb[14].mxu0  ;;  %v591_v11 = vld [vmem:[#allocation10 + $0x18] sm:$0xff] }
 0x154   :  { %v321_v23 = vpop.f32.mrb[15].mxu0  ;;  %v327_v24 = vadd.f32 %v845_v22, %v1261_v18 }
 0x155   :  { %v322_v25 = vadd.f32 %v1261_v18, %v321_v23 }
 0x157   :  { %v607_v26 = vpack.c.bf16 %v327_v24, %v322_v25  ;;  %v848_v28 = vpop.f32.mrb[16].mxu0 }
 0x158   :  { %v337_v29 = vadd.f32 %v848_v28, %v1261_v18  ;;  %v331_v30 = vpop.f32.mrb[17].mxu0 }
 0x159   :  { %v332_v31 = vadd.f32 %v1261_v18, %v331_v30 }
 0x15b   :  { %v608_v32 = vpack.c.bf16 %v337_v29, %v332_v31  ;;  %v851_v33 = vpop.f32.mrb[18].mxu0 }
 0x15c   :  { %v347_v34 = vadd.f32 %v851_v33, %v1261_v18  ;;  %v341_v35 = vpop.f32.mrb[19].mxu0 }
 0x15d   :  { %v342_v36 = vadd.f32 %v1261_v18, %v341_v35 }
 0x15f   :  { %v609_v37 = vpack.c.bf16 %v347_v34, %v342_v36 }
 0x1b7   :  { %v936_v48 = vpop.permute.xlu0 %935 }
 0x1b8   :  { %v938_v49 = vunpack.i.h.bf16 %v936_v48  ;;  %v937_v50 = vunpack.i.l.bf16 %v936_v48 }
 0x1ba   :  { %v898_v52 = vpack.c.bf16 %v938_v49, %v937_v50 }
 0x1bb   :  { %v941_v53 = vpop.permute.xlu0 %940 }
 0x1bc   :  { %900 = vmatprep.subr.msk.bf16.mxu1 %vm1281_vm1, %v898_v52  ;;  %v943_v54 = vunpack.i.h.bf16 %v941_v53  ;;  %v942_v55 = vunpack.i.l.bf16 %v941_v53 }
 0x1bd   :  { %903 = vmatpush3.bf16.xpose.msk.msra.mxu1 %vm1281_vm1, %v898_v52 }
 0x1be   :  { %v904_v56 = vpack.c.bf16 %v943_v54, %v942_v55 }
 0x1bf   :  { %v946_v57 = vpop.permute.xlu1 %945 }
 0x1c0   :  { %906 = vmatprep.subr.msk.bf16.mxu1 %vm1281_vm1, %v904_v56  ;;  %v948_v58 = vunpack.i.h.bf16 %v946_v57  ;;  %v947_v59 = vunpack.i.l.bf16 %v946_v57 }
 0x1c2   :  { %v910_v60 = vpack.c.bf16 %v948_v58, %v947_v59 }
 0x1c3   :  { %v951_v61 = vpop.permute.xlu1 %950 }
 0x1c4   :  { %v953_v62 = vunpack.i.h.bf16 %v951_v61  ;;  %v952_v63 = vunpack.i.l.bf16 %v951_v61  ;;  %v589_v61 = vld [vmem:[#allocation10 + $0x8] sm:$0xff] }
 0x1c5   :  { %909 = vmatpush3.bf16.xpose.msk.msra.mxu1 %vm1281_vm1, %v904_v56 }
 0x1c6   :  { %912 = vmatprep.subr.msk.bf16.mxu1 %vm1281_vm1, %v910_v60  ;;  %v916_v1 = vpack.c.bf16 %v953_v62, %v952_v63  ;;  %v588_v62 = vld [vmem:[#allocation10] sm:$0xff] }
 0x1cc   :  { %861 = vmatmul.mubr.msk.f32.vlgmr.msra.gmra.mrb[0].mxu1 %vm124_vm0, %v257_v0 }
 0x1cd   :  { %915 = vmatpush3.bf16.xpose.msk.msra.mxu1 %vm1281_vm1, %v910_v60  ;;  %871 = vmatprep.mubr.msk.f32.mxu1 %vm124_vm0, %v262_v2 }
 0x1ce   :  { %918 = vmatprep.subr.msk.bf16.mxu1 %vm1281_vm1, %v916_v1 }
 0x1d5   :  { %921 = vmatpush3.bf16.xpose.msk.msra.mxu1 %vm1281_vm1, %v916_v1 }
 0x1d6   :  { %874 = vmatprep.subr.bf16.mxu1 %v1119_v27 }
 0x1dc   :  { %872 = vmatmul.mubr.msk.f32.vlgmr.msra.gmra.mrb[2].mxu1 %vm124_vm0, %v267_v3 }
 0x1dd   :  { %878 = vmatprep.mubr.msk.bf16.mxu1 %vm1120_vm2, %v1119_v27 }
 0x29f   :  { %v862_v13 = vpop.f32.mrb[0].mxu1 }
 0x2a0   :  { %v442_v14 = vpop.f32.mrb[1].mxu1  ;;  %v555_v15 = vsel %vm124_vm0, %v862_v13, -inf }
 0x2a1   :  { %556 = vmax.xlane.f32.xlu1 %v555_v15  ;;  %v552_v16 = vsel %vm124_vm0, %v442_v14, -inf }
 0x2a2   :  { %553 = vmax.xlane.f32.xlu0 %v552_v16 }
 0x2af   :  { %v873_v17 = vpop.f32.mrb[2].mxu1 }
 0x2b0   :  { %v543_v19 = vpop.f32.mrb[3].mxu1  ;;  %v561_v21 = vsel %vm124_vm0, %v873_v17, -inf }
 0x2b1   :  { %v558_v20 = vsel %vm124_vm0, %v543_v19, -inf }
 0x2b2   :  { %559 = vmax.xlane.f32.xlu0 %v558_v20  ;;  %612 = vrot.lane.b32.xlu1 %v606_v12, %s1118_s3 }
 0x2b6   :  { %562 = vmax.xlane.f32.xlu0 %v561_v21 }
 0x32e   :  { %v557_v38 = vpop.xlane.xlu1 %556 }
 0x32f   :  { %v565_v39 = vsub.f32 %v862_v13, %v557_v38  ;;  %v554_v40 = vpop.xlane.xlu0 %553 }
 0x330   :  { %v564_v41 = vsub.f32 %v442_v14, %v554_v40 }
 0x331   :  { %v570_v42 = vmul.f32 1.442695, %v565_v39 }
 0x332   :  { %v568_v43 = vmul.f32 1.442695, %v564_v41  ;;  %v613_v44 = vpop.permute.xlu1 %612 }
 0x333   :  { %954 = vpow2.f32 %v570_v42  ;;  %875 = vmatpush3.bf16.msra.mxu1 %v613_v44 }
 0x334   :  { %956 = vpow2.f32 %v568_v43  ;;  %876 = vmatprep.subr.bf16.mxu1 %v1119_v27 }
 0x33d   :  { %v955_v45 = vpop.eup %954 }
 0x33e   :  { %v957_v46 = vpop.eup %956  ;;  %v579_v47 = vsel %vm124_vm0, %v955_v45, 0.0  ;;  %v593_v63 = vmul.f32 %v955_v45, %v589_v61 }
 0x33f   :  { %580 = vadd.xlane.f32.xlu0 %v579_v47  ;;  %v560_v48 = vpop.xlane.xlu0 %559  ;;  %v576_v18 = vsel %vm124_vm0, %v957_v46, 0.0  ;;  %v592_v1 = vmul.f32 %v957_v46, %v588_v62 }
 0x340   :  { %577 = vadd.xlane.f32.xlu1 %v576_v18  ;;  %v566_v54 = vsub.f32 %v543_v19, %v560_v48 }
 0x342   :  { %v572_v55 = vmul.f32 1.442695, %v566_v54 }
 0x343   :  { %v563_v49 = vpop.xlane.xlu0 %562 }
 0x344   :  { %v567_v50 = vsub.f32 %v873_v17, %v563_v49 }
 0x346   :  { %v574_v51 = vmul.f32 1.442695, %v567_v50 }
 0x348   :  { %958 = vpow2.f32 %v574_v51 }
 0x349   :  { %960 = vpow2.f32 %v572_v55 }
 0x351   :  { %614 = vrot.lane.b32.xlu1 %v607_v26, %s1118_s3 }
 0x352   :  { %v959_v52 = vpop.eup %958 }
 0x353   :  { %v585_v53 = vsel %vm124_vm0, %v959_v52, 0.0  ;;  %v961_v56 = vpop.eup %960  ;;  %v595_v14 = vmul.f32 %v959_v52, %v591_v11 }
 0x354   :  { %586 = vadd.xlane.f32.xlu0 %v585_v53  ;;  %v582_v57 = vsel %vm124_vm0, %v961_v56, 0.0  ;;  %v594_v13 = vmul.f32 %v961_v56, %v590_v10 }
 0x36a   :  { %664 = vrot.lane.b32.xlu0 %v608_v32, %s1118_s3 }
 0x375   :  { %583 = vadd.xlane.f32.xlu1 %v582_v57 }
 0x386   :  { %666 = vrot.lane.b32.xlu1 %v609_v37, %s1118_s3 }
 0x3cc   :  { %v581_v58 = vpop.xlane.xlu0 %580 }
 0x3cd   :  { %962 = vrcp.f32 %v581_v58  ;;  %v578_v59 = vpop.xlane.xlu1 %577 }
 0x3ce   :  { %964 = vrcp.f32 %v578_v59 }
 0x3d1   :  { %v615_v60 = vpop.permute.xlu1 %614 }
 0x3d2   :  { %877 = vmatpush3.bf16.msra.mxu1 %v615_v60 }
 0x3d7   :  { %v963_v0 = vpop.eup %962 }
 0x3d8   :  { %v965_v2 = vpop.eup %964  ;;  %v601_v3 = vmul.f32 %v963_v0, %v593_v63 }
 0x3d9   :  { %v600_v4 = vmul.f32 %v965_v2, %v592_v1 }
 0x3db   :  { %v604_v5 = vpack.c.bf16 %v601_v3, %v600_v4 }
 0x3dd   :  { %879 = vmatmul.mubr.msk.bf16.vlgmr.msra.gmra.mrb[4].mxu1 %vm124_vm0, %v604_v5 }
 0x3e1   :  { %v587_v6 = vpop.xlane.xlu0 %586 }
 0x3e2   :  { %966 = vrcp.f32 %v587_v6 }
 0x3e5   :  { %v665_v7 = vpop.permute.xlu0 %664 }
 0x3e6   :  { %883 = vmatpush3.bf16.msra.mxu0 %v665_v7 }
 0x3e7   :  { %884 = vmatprep.subr.bf16.mxu0 %v1119_v27 }
 0x3ec   :  { %v967_v12 = vpop.eup %966 }
 0x3ed   :  { %v603_v16 = vmul.f32 %v967_v12, %v595_v14 }
 0x402   :  { %v584_v8 = vpop.xlane.xlu1 %583 }
 0x403   :  { %968 = vrcp.f32 %v584_v8 }
 0x406   :  { %v667_v9 = vpop.permute.xlu1 %666 }
 0x407   :  { %885 = vmatpush3.bf16.msra.mxu0 %v667_v9 }
 0x40d   :  { %v969_v15 = vpop.eup %968 }
 0x40e   :  { %v602_v17 = vmul.f32 %v969_v15, %v594_v13 }
 0x410   :  { %v605_v19 = vpack.c.bf16 %v603_v16, %v602_v17 }
 0x412   :  { %887 = vmatmul.mubr.msk.bf16.vlgmr.msra.gmra.mrb[20].mxu0 %vm124_vm0, %v605_v19 }
 0x4b0   :  { %v655_v20 = vpop.f32.mrb[4].mxu1 }
 0x4b1   :  { %714 = vst.msk [vmem:[#allocation11] sm:$0xff] %vm124_vm0, %v655_v20  ;;  %v880_v21 = vpop.f32.mrb[5].mxu1 }
 0x4b2   :  { %v658_v22 = vpop.f32.mrb[6].mxu1 }
 0x4b3   :  { %715 = vst.msk [vmem:[#allocation11 + $0x8] sm:$0xff] %vm124_vm0, %v658_v22  ;;  %v881_v23 = vpop.f32.mrb[7].mxu1 }
 0x4e5   :  { %v707_v24 = vpop.f32.mrb[20].mxu0 }
 0x4e6   :  { %716 = vst.msk [vmem:[#allocation11 + $0x10] sm:$0xff] %vm124_vm0, %v707_v24  ;;  %v888_v25 = vpop.f32.mrb[21].mxu0 }
 0x4e7   :  { %v710_v26 = vpop.f32.mrb[22].mxu0 }
 0x4e8   :  { %717 = vst.msk [vmem:[#allocation11 + $0x18] sm:$0xff] %vm124_vm0, %v710_v26  ;;  %v889_v27 = vpop.f32.mrb[23].mxu0 }
 0x4e9   :  { %1091 = shalt.err (!%p1088_p2)
}
 0x4ea   :  { %s1092_s16 = scalar_lea.hbm %s1365_s6, 512 }
 0x4eb   :  { %p1093_p3 = scmp.ne.s32.totalorder %s1365_s6, %s1092_s16  ;;  %p1096_p4 = scmp.lt.u32.totalorder %s1092_s16, %s1365_s6 }
 0x4ed   :  { %p1098_p5 = pnand %p1096_p4, %p1093_p3 }
 0x4ef   :  { %1101 = shalt.err (!%p1098_p5)
}
 0x4f0   :  { %729 = dma.vmem_to_hbm [thread:$0]  %s724_s12, 512, %s1365_s6, [#allocation4], %s1112_s9, %s1112_s9, %s1113_s10  }
 0x4f1   :  { %1108 = dma.done.wait [#allocation4], 512  }
 0x4f2   :  { %1109 = vsyncadd [#allocation4], 4294966784 }
 0x4f3   :  { %733 = vsyncpa [#allocation3], 1 }
 0x4f4   :  { %734 = vsyncpa [#allocation6], 1 }
 0x4f5   :  { %735 = vsyncpa [#allocation9], 1 }
 0x4f6   :  { %736 = vsyncpa [#allocation4], 1 }

</bundles_post_ra>
